<compile_context>
chip_gen: v7x
topology: tpu7x:2x2x1
jax: 0.10.0
libtpu: 0.0.40
codegen_flags: <defaults>
</compile_context>

<pallas_src>
import jax
import jax.numpy as jnp
from jax.experimental import pallas as pl
from jax.experimental.pallas import tpu as pltpu


def _round_up(x, m):
    return (x + m - 1) // m * m


def _make_kernel(BT, N, DI, DQ, H, n_pad, mxu_dtype):
    def kernel(img_ref, q_ref, wq_ref, bq_ref, wkv_ref, bkv_ref, wo_ref, bo_ref,
               mh_eh_ref, mh_he_ref, out_ref, attn_ref):
        # ---------------- fused input projections (batched over the whole tile) ----------
        img = img_ref[...].reshape(BT * N, DI)                     # [BT*N, DI]  bf16
        kv = (jnp.dot(img, wkv_ref[...],
                      preferred_element_type=jnp.float32)
              + bkv_ref[...])                                       # [BT*N, 2*DQ] f32
        k = kv[:, :DQ]                                              # 128-aligned lane slice
        v = kv[:, DQ:]

        # q projection; 1/sqrt(Dh) scale already folded into wq/bq on the host.
        q = (jnp.dot(q_ref[...].astype(mxu_dtype), wq_ref[...],
                     preferred_element_type=jnp.float32)
             + bq_ref[...])                                         # [BT, DQ] f32

        # ---------------- per-head logits via block-diagonal head mask -------------------
        # logits[b, n, h] = sum_{e in head h} q[b, e] * k[b, n, e]
        k3 = k.reshape(BT, N, DQ)
        s = (q[:, None, :] * k3).reshape(BT * N, DQ)                # [BT*N, DQ] f32
        logits = jnp.dot(s, mh_eh_ref[...],
                         preferred_element_type=jnp.float32)        # [BT*N, H]
        logits = logits.reshape(BT, N, H)

        # ---------------- exact softmax over the key axis (n) ----------------------------
        # TODO(synk): for large region counts N, move the softmax to a [BT*H, N] (N on
        # lanes) layout; at N=16 the two extra transposes cost more than they save.
        m = jnp.max(logits, axis=1, keepdims=True)                  # [BT, 1, H]
        e = jnp.exp(logits - m)
        denom = jnp.sum(e, axis=1, keepdims=True)                   # [BT, 1, H]
        p = e / denom                                               # exact; denom is tiny

        # ---------------- context: ctx[b, e] = sum_n p[b, n, head(e)] * v[b, n, e] -------
        p_exp = jnp.dot(p.reshape(BT * N, H), mh_he_ref[...],
                        preferred_element_type=jnp.float32)          # [BT*N, DQ]
        ctx = jnp.sum((p_exp * v).reshape(BT, N, DQ), axis=1)        # [BT, DQ]

        # ---------------- output projection (lane-dense [BT, DQ] store) ------------------
        out_ref[...] = (jnp.dot(ctx.astype(mxu_dtype), wo_ref[...],
                                preferred_element_type=jnp.float32)
                        + bo_ref[...])

        # head-averaged attention weights (PyTorch average_attn_weights=True default),
        # written into a lane-dense padded slab; wrapper slices [:, :N].
        attn = jnp.mean(p, axis=2)                                   # [BT, N]
        if n_pad > N:
            attn_ref[...] = jnp.zeros((BT, n_pad), jnp.float32)
        attn_ref[:, 0:N] = attn

    return kernel


def _vmem_bytes(BT, N, DI, DQ, H, n_pad, mxu_bytes):
    """Rough double-buffered VMEM footprint of one grid step."""
    blocks = (BT * N * DI * mxu_bytes          # image tile (bf16)
              + BT * DQ * 4                    # question tile
              + BT * DQ * 4 + BT * n_pad * 4)  # output tiles
    weights = ((DQ * DQ + DI * 2 * DQ + DQ * DQ) * mxu_bytes   # wq / wkv / wo
               + (DQ + 2 * DQ + DQ) * 4                        # bq / bkv / bo
               + 2 * DQ * H * 4)                                # head-mask matrices
    return 2 * blocks + 2 * weights


def _pick_batch_tile(B, N, DI, DQ, H, n_pad, mxu_bytes, budget):
    # Largest batch tile (divisor of B, sublane-aligned unless it is the whole batch)
    # whose double-buffered working set fits the VMEM budget.
    # On v7x (2 TensorCores) pass batch_tile <= B/2 explicitly to get a grid of >= 2.
    cands = [bt for bt in range(B, 0, -1)
             if B % bt == 0 and (bt == B or bt % 8 == 0)]
    for bt in cands:
        if _vmem_bytes(bt, N, DI, DQ, H, n_pad, mxu_bytes) <= budget:
            return bt
    return cands[-1]


def multi_head_image_feature_embedding(image_feat, question_emb, image_dims, params,
                                       extra=None, *, batch_tile=None,
                                       mxu_dtype=jnp.bfloat16,
                                       vmem_budget_bytes=32 * 1024 * 1024):
    """image_feat: [B, N, img_dim] f32, question_emb: [B, q_dim] f32.
    Returns (output [B, q_dim], attn_weights [B, 1, N])."""
    del image_dims, extra   # reference forward applies no key-padding mask
    # TODO(synk): add a key_padding_mask path if variable region counts must be masked.
    B, N, DI = image_feat.shape
    _, DQ = question_emb.shape
    H = params["num_heads"]
    assert DQ % H == 0
    Dh = DQ // H
    # keep the BT*N leading-dim reshapes free of relayout copies
    assert N % 8 == 0, "pad N (image regions) to a multiple of 8 (and mask padded keys)"

    n_pad = _round_up(N, 128)                       # lane-dense attn-weights output slab
    mxu_bytes = jnp.dtype(mxu_dtype).itemsize

    if batch_tile is None:
        batch_tile = _pick_batch_tile(B, N, DI, DQ, H, n_pad, mxu_bytes, vmem_budget_bytes)
    BT = batch_tile
    assert B % BT == 0 and (BT == B or BT % 8 == 0)

    # ---- host-side parameter prep: fold softmax scale into wq/bq, fuse K/V, cast to bf16
    scale = float(Dh) ** -0.5
    wq = (params["wq_T"] * scale).astype(mxu_dtype)
    bq = (params["bq"] * scale).astype(jnp.float32)
    wkv = jnp.concatenate([params["wk_T"], params["wv_T"]], axis=1).astype(mxu_dtype)
    bkv = jnp.concatenate([params["bk"], params["bv"]], axis=1).astype(jnp.float32)
    wo = params["wo_T"].astype(mxu_dtype)
    bo = params["bo"].astype(jnp.float32)

    # block-diagonal head-membership masks (constants, built once on the host)
    head_of_e = jnp.arange(DQ, dtype=jnp.int32) // Dh
    mh_eh = (head_of_e[:, None] == jnp.arange(H, dtype=jnp.int32)[None, :]).astype(jnp.float32)
    mh_he = mh_eh.T

    img = image_feat.astype(mxu_dtype)   # halves the dominant HBM->VMEM transfer

    kernel = _make_kernel(BT, N, DI, DQ, H, n_pad, mxu_dtype)
    full2d = lambda b: (0, 0)

    flops = (2 * B * N * DI * (2 * DQ)        # fused K/V projection
             + 2 * B * DQ * DQ                # q projection
             + 2 * B * DQ * DQ                # output projection
             + 2 * B * N * DQ * H             # logits mask matmul
             + 2 * B * N * H * DQ)            # head -> lane expansion matmul
    bytes_accessed = (B * N * DI * mxu_bytes + B * DQ * 4
                      + (wq.size + wkv.size + wo.size) * mxu_bytes
                      + (bq.size + bkv.size + bo.size + mh_eh.size + mh_he.size) * 4
                      + B * DQ * 4 + B * n_pad * 4)
    cost = pl.CostEstimate(flops=flops, transcendentals=B * N * H,
                           bytes_accessed=bytes_accessed)

    out, attn = pl.pallas_call(
        kernel,
        out_shape=(jax.ShapeDtypeStruct((B, DQ), jnp.float32),
                   jax.ShapeDtypeStruct((B, n_pad), jnp.float32)),
        grid_spec=pltpu.PrefetchScalarGridSpec(
            num_scalar_prefetch=0,
            grid=(B // BT,),
            in_specs=[
                pl.BlockSpec((BT, N, DI), lambda b: (b, 0, 0)),   # image features (bf16)
                pl.BlockSpec((BT, DQ), lambda b: (b, 0)),         # question embedding
                pl.BlockSpec(wq.shape, full2d),
                pl.BlockSpec(bq.shape, full2d),
                pl.BlockSpec(wkv.shape, full2d),
                pl.BlockSpec(bkv.shape, full2d),
                pl.BlockSpec(wo.shape, full2d),
                pl.BlockSpec(bo.shape, full2d),
                pl.BlockSpec(mh_eh.shape, full2d),
                pl.BlockSpec(mh_he.shape, full2d),
            ],
            out_specs=[pl.BlockSpec((BT, DQ), lambda b: (b, 0)),
                       pl.BlockSpec((BT, n_pad), lambda b: (b, 0))],
        ),
        compiler_params=pltpu.CompilerParams(
            dimension_semantics=("parallel",),
            vmem_limit_bytes=int(vmem_budget_bytes)),
        cost_estimate=cost,
    )(img, question_emb, wq, bq, wkv, bkv, wo, bo, mh_eh, mh_he)

    # torch: output.transpose(0, 1).squeeze() -> [B, q_dim]; weights -> [B, 1, N]
    return out, attn[:, :N].reshape(B, 1, N)


def reference(image_feat, question_emb, params, matmul_dtype=jnp.float32):
    """Pure-JAX reference matching nn.MultiheadAttention (eval, dropout=0, bias=True).
    matmul_dtype=bf16 mirrors the kernel's MXU feeding for apples-to-apples checks."""
    B, N, DI = image_feat.shape
    DQ = question_emb.shape[1]
    H = params["num_heads"]
    Dh = DQ // H
    scale = float(Dh) ** -0.5
    dot = lambda a, b: jnp.dot(a.astype(matmul_dtype), b.astype(matmul_dtype),
                               preferred_element_type=jnp.float32)
    q = dot(question_emb, params["wq_T"] * scale) + params["bq"] * scale
    k = dot(image_feat.reshape(B * N, DI), params["wk_T"]).reshape(B, N, DQ) + params["bk"]
    v = dot(image_feat.reshape(B * N, DI), params["wv_T"]).reshape(B, N, DQ) + params["bv"]
    qh = q.reshape(B, H, Dh)
    kh = k.reshape(B, N, H, Dh)
    vh = v.reshape(B, N, H, Dh)
    logits = jnp.einsum("bhd,bnhd->bhn", qh, kh)
    p = jax.nn.softmax(logits, axis=-1)                       # [B, H, N]
    ctx = jnp.einsum("bhn,bnhd->bhd", p, vh).reshape(B, DQ)
    out = dot(ctx, params["wo_T"]) + params["bo"]
    return out, jnp.mean(p, axis=1)[:, None, :]


def init_params(key, *, img_dim, question_dim, num_heads):
    """Deterministic synthetic parameters (pre-transposed for the kernel)."""
    assert question_dim % num_heads == 0
    ks = jax.random.split(key, 8)
    s = 0.1
    return {
        "wq_T": s * jax.random.normal(ks[0], (question_dim, question_dim), jnp.float32),
        "bq":   s * jax.random.normal(ks[1], (1, question_dim), jnp.float32),
        "wk_T": s * jax.random.normal(ks[2], (img_dim, question_dim), jnp.float32),
        "bk":   s * jax.random.normal(ks[3], (1, question_dim), jnp.float32),
        "wv_T": s * jax.random.normal(ks[4], (img_dim, question_dim), jnp.float32),
        "bv":   s * jax.random.normal(ks[5], (1, question_dim), jnp.float32),
        "wo_T": s * jax.random.normal(ks[6], (question_dim, question_dim), jnp.float32),
        "bo":   s * jax.random.normal(ks[7], (1, question_dim), jnp.float32),
        "num_heads": num_heads,
    }


if __name__ == "__main__":
    # Small shapes consistent with the module: B=2 batch, N=16 image regions,
    # img_dim=64, question_dim=128 (lane-dense output), num_heads=8 -> head_dim=16.
    B, N = 2, 16
    img_dim = 64
    question_dim = 128
    num_heads = 8
    # dropout = 0.0 (identity at eval time)

    key = jax.random.PRNGKey(0)
    k_img, k_q, k_p = jax.random.split(key, 3)
    image_feat = jax.random.normal(k_img, (B, N, img_dim), jnp.float32)
    question_emb = jax.random.normal(k_q, (B, question_dim), jnp.float32)
    image_dims = jnp.full((B,), N, jnp.int32)   # unused by the forward, mirrors the API
    params = init_params(k_p, img_dim=img_dim, question_dim=question_dim,
                         num_heads=num_heads)

    out, weights = multi_head_image_feature_embedding(
        image_feat, question_emb, image_dims, params)
    out = jax.block_until_ready(out)
    weights = jax.block_until_ready(weights)

    assert out.shape == (B, question_dim), out.shape
    assert weights.shape == (B, 1, N), weights.shape
    assert bool(jnp.all(jnp.isfinite(out))) and bool(jnp.all(jnp.isfinite(weights)))

    # exact softmax in-kernel -> attention weights sum to 1 over the key axis
    assert bool(jnp.allclose(jnp.sum(weights, axis=-1), 1.0, atol=1e-4))

    # apples-to-apples check: reference using the same bf16 MXU feeding
    ref_out_bf, ref_w_bf = reference(image_feat, question_emb, params,
                                     matmul_dtype=jnp.bfloat16)
    assert bool(jnp.allclose(out, ref_out_bf, atol=2e-3, rtol=2e-3))
    assert bool(jnp.allclose(weights, ref_w_bf, atol=1e-3, rtol=1e-3))

    # sanity vs the exact f32 reference (bf16 MXU inputs -> looser tolerance)
    ref_out, ref_w = reference(image_feat, question_emb, params)
    assert bool(jnp.allclose(out, ref_out, atol=3e-2, rtol=3e-2))
    assert bool(jnp.allclose(weights, ref_w, atol=1e-2, rtol=1e-2))

    print("KERNEL_OK")
</pallas_src>

<mosaic_0001>
module attributes {stable_mosaic.version = 11 : i64} {
  func.func @kernel(%arg0: i32, %arg1: memref<2x16x64xbf16, #tpu.memory_space<vmem>>, %arg2: memref<2x128xf32, #tpu.memory_space<vmem>>, %arg3: memref<128x128xbf16, #tpu.memory_space<vmem>>, %arg4: memref<1x128xf32, #tpu.memory_space<vmem>>, %arg5: memref<64x256xbf16, #tpu.memory_space<vmem>>, %arg6: memref<1x256xf32, #tpu.memory_space<vmem>>, %arg7: memref<128x128xbf16, #tpu.memory_space<vmem>>, %arg8: memref<1x128xf32, #tpu.memory_space<vmem>>, %arg9: memref<128x8xf32, #tpu.memory_space<vmem>>, %arg10: memref<8x128xf32, #tpu.memory_space<vmem>>, %arg11: memref<2x128xf32, #tpu.memory_space<vmem>>, %arg12: memref<2x128xf32, #tpu.memory_space<vmem>>) attributes {dimension_semantics = [#tpu.dimension_semantics<parallel>], iteration_bounds = array<i64: 1>, scalar_prefetch = 0 : i64, scratch_operands = 0 : i64, tpu.core_type = #tpu.core_type<tc>, window_params = [{transform_indices = @transform_0, window_bounds = array<i64: 2, 16, 64>}, {transform_indices = @transform_1, window_bounds = array<i64: 2, 128>}, {pipeline_mode = #tpu.pipeline_mode<synchronous>, transform_indices = @transform_2, window_bounds = array<i64: 128, 128>}, {pipeline_mode = #tpu.pipeline_mode<synchronous>, transform_indices = @transform_3, window_bounds = array<i64: 1, 128>}, {pipeline_mode = #tpu.pipeline_mode<synchronous>, transform_indices = @transform_4, window_bounds = array<i64: 64, 256>}, {pipeline_mode = #tpu.pipeline_mode<synchronous>, transform_indices = @transform_5, window_bounds = array<i64: 1, 256>}, {pipeline_mode = #tpu.pipeline_mode<synchronous>, transform_indices = @transform_6, window_bounds = array<i64: 128, 128>}, {pipeline_mode = #tpu.pipeline_mode<synchronous>, transform_indices = @transform_7, window_bounds = array<i64: 1, 128>}, {pipeline_mode = #tpu.pipeline_mode<synchronous>, transform_indices = @transform_8, window_bounds = array<i64: 128, 8>}, {pipeline_mode = #tpu.pipeline_mode<synchronous>, transform_indices = @transform_9, window_bounds = array<i64: 8, 128>}, {transform_indices = @transform_10, window_bounds = array<i64: 2, 128>}, {transform_indices = @transform_11, window_bounds = array<i64: 2, 128>}]} {
    %c0 = arith.constant 0 : index
    %c0_0 = arith.constant 0 : index
    %c0_1 = arith.constant 0 : index
    %0 = vector.load %arg1[%c0, %c0_0, %c0_1] : memref<2x16x64xbf16, #tpu.memory_space<vmem>>, vector<2x16x64xbf16>
    %1 = vector.shape_cast %0 : vector<2x16x64xbf16> to vector<32x64xbf16>
    %c0_2 = arith.constant 0 : index
    %c0_3 = arith.constant 0 : index
    %2 = vector.load %arg5[%c0_2, %c0_3] : memref<64x256xbf16, #tpu.memory_space<vmem>>, vector<64x256xbf16>
    %cst = arith.constant dense<0.000000e+00> : vector<32x256xf32>
    %3 = tpu.matmul %1, %2, %cst {dimension_numbers = #tpu.dot_dimension_numbers<[1], [0], [0], [1], [0, 0, 1, 1], [], []>} : vector<32x64xbf16>, vector<64x256xbf16>, vector<32x256xf32> -> vector<32x256xf32>
    %c0_4 = arith.constant 0 : index
    %c0_5 = arith.constant 0 : index
    %4 = vector.load %arg6[%c0_4, %c0_5] : memref<1x256xf32, #tpu.memory_space<vmem>>, vector<1x256xf32>
    %5 = vector.broadcast %4 : vector<1x256xf32> to vector<32x256xf32>
    %6 = arith.addf %3, %5 : vector<32x256xf32>
    %7 = vector.extract_strided_slice %6 {offsets = [0, 0], sizes = [32, 128], strides = [1, 1]} : vector<32x256xf32> to vector<32x128xf32>
    %8 = vector.extract_strided_slice %6 {offsets = [0, 128], sizes = [32, 128], strides = [1, 1]} : vector<32x256xf32> to vector<32x128xf32>
    %c0_6 = arith.constant 0 : index
    %c0_7 = arith.constant 0 : index
    %9 = vector.load %arg2[%c0_6, %c0_7] : memref<2x128xf32, #tpu.memory_space<vmem>>, vector<2x128xf32>
    %10 = arith.truncf %9 : vector<2x128xf32> to vector<2x128xbf16>
    %c0_8 = arith.constant 0 : index
    %c0_9 = arith.constant 0 : index
    %11 = vector.load %arg3[%c0_8, %c0_9] : memref<128x128xbf16, #tpu.memory_space<vmem>>, vector<128x128xbf16>
    %cst_10 = arith.constant dense<0.000000e+00> : vector<2x128xf32>
    %12 = tpu.matmul %10, %11, %cst_10 {dimension_numbers = #tpu.dot_dimension_numbers<[1], [0], [0], [1], [0, 0, 1, 1], [], []>} : vector<2x128xbf16>, vector<128x128xbf16>, vector<2x128xf32> -> vector<2x128xf32>
    %c0_11 = arith.constant 0 : index
    %c0_12 = arith.constant 0 : index
    %13 = vector.load %arg4[%c0_11, %c0_12] : memref<1x128xf32, #tpu.memory_space<vmem>>, vector<1x128xf32>
    %14 = vector.broadcast %13 : vector<1x128xf32> to vector<2x128xf32>
    %15 = arith.addf %12, %14 : vector<2x128xf32>
    %16 = vector.shape_cast %7 : vector<32x128xf32> to vector<2x16x128xf32>
    %17 = vector.shape_cast %15 : vector<2x128xf32> to vector<2x1x128xf32>
    %18 = vector.broadcast %17 : vector<2x1x128xf32> to vector<2x16x128xf32>
    %19 = arith.mulf %18, %16 : vector<2x16x128xf32>
    %20 = vector.shape_cast %19 : vector<2x16x128xf32> to vector<32x128xf32>
    %c0_13 = arith.constant 0 : index
    %c0_14 = arith.constant 0 : index
    %21 = vector.load %arg9[%c0_13, %c0_14] : memref<128x8xf32, #tpu.memory_space<vmem>>, vector<128x8xf32>
    %cst_15 = arith.constant dense<0.000000e+00> : vector<32x8xf32>
    %22 = tpu.matmul %20, %21, %cst_15 {dimension_numbers = #tpu.dot_dimension_numbers<[1], [0], [0], [1], [0, 0, 1, 1], [], []>} : vector<32x128xf32>, vector<128x8xf32>, vector<32x8xf32> -> vector<32x8xf32>
    %23 = vector.shape_cast %22 : vector<32x8xf32> to vector<2x16x8xf32>
    %cst_16 = arith.constant dense<0xFF800000> : vector<2x8xf32>
    %24 = vector.multi_reduction <maximumf>, %23, %cst_16 [1] : vector<2x16x8xf32> to vector<2x8xf32>
    %25 = vector.shape_cast %24 : vector<2x8xf32> to vector<2x1x8xf32>
    %26 = vector.broadcast %25 : vector<2x1x8xf32> to vector<2x16x8xf32>
    %27 = arith.subf %23, %26 : vector<2x16x8xf32>
    %28 = math.exp %27 : vector<2x16x8xf32>
    %cst_17 = arith.constant dense<0.000000e+00> : vector<2x8xf32>
    %29 = vector.multi_reduction <add>, %28, %cst_17 [1] : vector<2x16x8xf32> to vector<2x8xf32>
    %30 = vector.shape_cast %29 : vector<2x8xf32> to vector<2x1x8xf32>
    %31 = vector.broadcast %30 : vector<2x1x8xf32> to vector<2x16x8xf32>
    %32 = arith.divf %28, %31 : vector<2x16x8xf32>
    %33 = vector.shape_cast %32 : vector<2x16x8xf32> to vector<32x8xf32>
    %c0_18 = arith.constant 0 : index
    %c0_19 = arith.constant 0 : index
    %34 = vector.load %arg10[%c0_18, %c0_19] : memref<8x128xf32, #tpu.memory_space<vmem>>, vector<8x128xf32>
    %cst_20 = arith.constant dense<0.000000e+00> : vector<32x128xf32>
    %35 = tpu.matmul %33, %34, %cst_20 {dimension_numbers = #tpu.dot_dimension_numbers<[1], [0], [0], [1], [0, 0, 1, 1], [], []>} : vector<32x8xf32>, vector<8x128xf32>, vector<32x128xf32> -> vector<32x128xf32>
    %36 = arith.mulf %35, %8 : vector<32x128xf32>
    %37 = vector.shape_cast %36 : vector<32x128xf32> to vector<2x16x128xf32>
    %cst_21 = arith.constant dense<0.000000e+00> : vector<2x128xf32>
    %38 = vector.multi_reduction <add>, %37, %cst_21 [1] : vector<2x16x128xf32> to vector<2x128xf32>
    %39 = arith.truncf %38 : vector<2x128xf32> to vector<2x128xbf16>
    %c0_22 = arith.constant 0 : index
    %c0_23 = arith.constant 0 : index
    %40 = vector.load %arg7[%c0_22, %c0_23] : memref<128x128xbf16, #tpu.memory_space<vmem>>, vector<128x128xbf16>
    %cst_24 = arith.constant dense<0.000000e+00> : vector<2x128xf32>
    %41 = tpu.matmul %39, %40, %cst_24 {dimension_numbers = #tpu.dot_dimension_numbers<[1], [0], [0], [1], [0, 0, 1, 1], [], []>} : vector<2x128xbf16>, vector<128x128xbf16>, vector<2x128xf32> -> vector<2x128xf32>
    %c0_25 = arith.constant 0 : index
    %c0_26 = arith.constant 0 : index
    %42 = vector.load %arg8[%c0_25, %c0_26] : memref<1x128xf32, #tpu.memory_space<vmem>>, vector<1x128xf32>
    %43 = vector.broadcast %42 : vector<1x128xf32> to vector<2x128xf32>
    %44 = arith.addf %41, %43 : vector<2x128xf32>
    %c0_27 = arith.constant 0 : index
    %c0_28 = arith.constant 0 : index
    %45 = vector.load %arg11[%c0_27, %c0_28] : memref<2x128xf32, #tpu.memory_space<vmem>>, vector<2x128xf32>
    tpu.vector_store %arg11[%c0_27, %c0_28], %44 {strides = array<i32>} : memref<2x128xf32, #tpu.memory_space<vmem>>, vector<2x128xf32>,
    %cst_29 = arith.constant dense<0.000000e+00> : vector<2x16xf32>
    %46 = vector.multi_reduction <add>, %32, %cst_29 [2] : vector<2x16x8xf32> to vector<2x16xf32>
    %cst_30 = arith.constant 8.000000e+00 : f32
    %47 = vector.broadcast %cst_30 : f32 to vector<2x16xf32>
    %48 = arith.divf %46, %47 : vector<2x16xf32>
    %cst_31 = arith.constant 0.000000e+00 : f32
    %49 = vector.broadcast %cst_31 : f32 to vector<2x128xf32>
    %c0_32 = arith.constant 0 : index
    %c0_33 = arith.constant 0 : index
    %50 = vector.load %arg12[%c0_32, %c0_33] : memref<2x128xf32, #tpu.memory_space<vmem>>, vector<2x128xf32>
    tpu.vector_store %arg12[%c0_32, %c0_33], %49 {strides = array<i32>} : memref<2x128xf32, #tpu.memory_space<vmem>>, vector<2x128xf32>,
    %c0_34 = arith.constant 0 : index
    %c0_35 = arith.constant 0 : index
    %51 = vector.load %arg12[%c0_34, %c0_35] : memref<2x128xf32, #tpu.memory_space<vmem>>, vector<2x16xf32>
    tpu.vector_store %arg12[%c0_34, %c0_35], %48 {strides = array<i32>} : memref<2x128xf32, #tpu.memory_space<vmem>>, vector<2x16xf32>,
    return
  }
  func.func @transform_0(%arg0: i32) -> (i32, i32, i32) {
    %c0_i32 = arith.constant 0 : i32
    %c0_i32_0 = arith.constant 0 : i32
    %c0_i32_1 = arith.constant 0 : i32
    return %arg0, %c0_i32, %c0_i32_0 : i32, i32, i32
  }
  func.func @transform_1(%arg0: i32) -> (i32, i32) {
    %c0_i32 = arith.constant 0 : i32
    %c0_i32_0 = arith.constant 0 : i32
    return %arg0, %c0_i32 : i32, i32
  }
  func.func @transform_2(%arg0: i32) -> (i32, i32) {
    %c0_i32 = arith.constant 0 : i32
    %c0_i32_0 = arith.constant 0 : i32
    %c0_i32_1 = arith.constant 0 : i32
    return %c0_i32, %c0_i32_0 : i32, i32
  }
  func.func @transform_3(%arg0: i32) -> (i32, i32) {
    %c0_i32 = arith.constant 0 : i32
    %c0_i32_0 = arith.constant 0 : i32
    %c0_i32_1 = arith.constant 0 : i32
    return %c0_i32, %c0_i32_0 : i32, i32
  }
  func.func @transform_4(%arg0: i32) -> (i32, i32) {
    %c0_i32 = arith.constant 0 : i32
    %c0_i32_0 = arith.constant 0 : i32
    %c0_i32_1 = arith.constant 0 : i32
    return %c0_i32, %c0_i32_0 : i32, i32
  }
  func.func @transform_5(%arg0: i32) -> (i32, i32) {
    %c0_i32 = arith.constant 0 : i32
    %c0_i32_0 = arith.constant 0 : i32
    %c0_i32_1 = arith.constant 0 : i32
    return %c0_i32, %c0_i32_0 : i32, i32
  }
  func.func @transform_6(%arg0: i32) -> (i32, i32) {
    %c0_i32 = arith.constant 0 : i32
    %c0_i32_0 = arith.constant 0 : i32
    %c0_i32_1 = arith.constant 0 : i32
    return %c0_i32, %c0_i32_0 : i32, i32
  }
  func.func @transform_7(%arg0: i32) -> (i32, i32) {
    %c0_i32 = arith.constant 0 : i32
    %c0_i32_0 = arith.constant 0 : i32
    %c0_i32_1 = arith.constant 0 : i32
    return %c0_i32, %c0_i32_0 : i32, i32
  }
  func.func @transform_8(%arg0: i32) -> (i32, i32) {
    %c0_i32 = arith.constant 0 : i32
    %c0_i32_0 = arith.constant 0 : i32
    %c0_i32_1 = arith.constant 0 : i32
    return %c0_i32, %c0_i32_0 : i32, i32
  }
  func.func @transform_9(%arg0: i32) -> (i32, i32) {
    %c0_i32 = arith.constant 0 : i32
    %c0_i32_0 = arith.constant 0 : i32
    %c0_i32_1 = arith.constant 0 : i32
    return %c0_i32, %c0_i32_0 : i32, i32
  }
  func.func @transform_10(%arg0: i32) -> (i32, i32) {
    %c0_i32 = arith.constant 0 : i32
    %c0_i32_0 = arith.constant 0 : i32
    return %arg0, %c0_i32 : i32, i32
  }
  func.func @transform_11(%arg0: i32) -> (i32, i32) {
    %c0_i32 = arith.constant 0 : i32
    %c0_i32_0 = arith.constant 0 : i32
    return %arg0, %c0_i32 : i32, i32
  }
}

</mosaic_0001>

<bundles_post_ra>
// kernel: tpu_custom_call.1
= control target key start
LH: loop header
LB: loop body
LE: loop exit
PB: predicated region body
PF: predicated region fallthrough
CT: control target
= control target key end

     0   :  { %17 = vsyncpa [#allocation3], 0  ;;  %s1462_s0 = inlined_call_operand.hbm [shape: bf16[2,16,64], index: 0, kind: input, shape index: {}]   ;;  %s1463_s1 = inlined_call_operand.vmem [shape: f32[2,128], index: 1, kind: input, shape index: {}]   ;;  %s1464_s2 = inlined_call_operand.vmem [shape: bf16[128,128], index: 2, kind: input, shape index: {}]   ;;  %s1465_s3 = inlined_call_operand.vmem [shape: f32[1,128], index: 3, kind: input, shape index: {}]   ;;  %s1466_s4 = inlined_call_operand.vmem [shape: bf16[64,256], index: 4, kind: input, shape index: {}]   ;;  %s1467_s5 = inlined_call_operand.vmem [shape: f32[1,256], index: 5, kind: input, shape index: {}]   ;;  %s1468_s6 = inlined_call_operand.hbm [shape: bf16[128,128], index: 6, kind: input, shape index: {}]   ;;  %s1469_s7 = inlined_call_operand.vmem [shape: f32[1,128], index: 7, kind: input, shape index: {}]   ;;  %s1470_s8 = inlined_call_operand.vmem [shape: f32[128,8], index: 8, kind: input, shape index: {}]   ;;  %s1471_s9 = inlined_call_operand.vmem [shape: f32[8,128], index: 9, kind: input, shape index: {}]   ;;  %s1472_s10 = inlined_call_operand.hbm [shape: f32[2,128], index: 10, kind: output, shape index: {0}]   ;;  %s1473_s11 = inlined_call_operand.hbm [shape: f32[2,128], index: 11, kind: output, shape index: {1}]  }
   0x1   :  { %18 = vsyncpa [#allocation6], 0 }
   0x2   :  { %19 = vsyncpa [#allocation4], 0 }
   0x3   :  { %20 = vsyncpa [#allocation9], 0  ;;  %s1167_s17 = smov [#allocation2]   ;;  %s1071_s21 = scalar_lea.hbm %s1462_s0, 256 }
   0x4   :  { %s26_s18 = sshll.u32 %s1167_s17, 4  ;;  %p1072_p0 = scmp.ne.s32.totalorder %s1462_s0, %s1071_s21  ;;  %s27_s18 = int_to_ptr.vmem [resolvable:$true] %s26_s18 }
   0x5   :  { %p1075_p1 = scmp.lt.u32.totalorder %s1071_s21, %s1462_s0 }
   0x7   :  { %p1077_p2 = pnand %p1075_p1, %p1072_p0 }
   0x9   :  { %1080 = shalt.err (!%p1077_p2)
}
   0xa   :  { %s1081_s26 = scalar_lea.vmem %s27_s18, 256  ;;  %p1086_p4 = scmp.lt.s32.totalorder %s27_s18, %s27_s18 }
   0xb   :  { %p1082_p3 = scmp.ne.s32.totalorder %s27_s18, %s1081_s26  ;;  %p1087_p5 = scmp.lt.s32.totalorder %s1081_s26, %s1081_s26 }
   0xd   :  { %p1088_p6 = por %p1087_p5, %p1086_p4 }
   0xf   :  { %p1089_p7 = pnand %p1088_p6, %p1082_p3 }
  0x11   :  { %1092 = shalt.err (!%p1089_p7)
}
  0x12   :  { %s1168_s27 = smov 64   ;;  %s1169_s28 = smov 4  }
  0x13   :  { %32 = dma.hbm_to_vmem [thread:$0]  %s1462_s0, 256, %s27_s18, [#allocation3], %s1168_s27, %s1168_s27, %s1169_s28  }
  0x14   :  { %s1170_s12 = smov [#allocation5]   ;;  %s1093_s16 = scalar_lea.hbm %s1468_s6, 1024 }
  0x15   :  { %s48_s13 = sshll.u32 %s1170_s12, 4  ;;  %p1094_p8 = scmp.ne.s32.totalorder %s1468_s6, %s1093_s16  ;;  %s49_s13 = int_to_ptr.vmem [resolvable:$true] %s48_s13 }
  0x16   :  { %p1097_p9 = scmp.lt.u32.totalorder %s1093_s16, %s1468_s6 }
  0x18   :  { %p1099_p10 = pnand %p1097_p9, %p1094_p8 }
  0x1a   :  { %1102 = shalt.err (!%p1099_p10)
}
  0x1b   :  { %s1103_s22 = scalar_lea.vmem %s49_s13, 1024  ;;  %p1108_p12 = scmp.lt.s32.totalorder %s49_s13, %s49_s13 }
  0x1c   :  { %p1104_p11 = scmp.ne.s32.totalorder %s49_s13, %s1103_s22  ;;  %p1109_p13 = scmp.lt.s32.totalorder %s1103_s22, %s1103_s22 }
  0x1e   :  { %p1110_p0 = por %p1109_p13, %p1108_p12 }
  0x20   :  { %p1111_p1 = pnand %p1110_p0, %p1104_p11 }
  0x22   :  { %1114 = shalt.err (!%p1111_p1)
}
  0x23   :  { %54 = dma.hbm_to_vmem [thread:$0]  %s1468_s6, 1024, %s49_s13, [#allocation6], %s1168_s27, %s1168_s27, %s1169_s28  }
  0x24   :  { %1159 = dma.done.wait [#allocation3], 256  }
  0x25   :  { %1160 = vsyncadd [#allocation3], 4294967040 }
  0x26   :  { %1161 = dma.done.wait [#allocation6], 1024  }
  0x27   :  { %1162 = vsyncadd [#allocation6], 4294966272  ;;  %v1171_v0 = vmov 0.0   ;;  %v1172_v1 = vmov 0   ;;  %vm1173_vm0 = vmmov 0   ;;  %v1029_v2 = vld [vmem:[%s1464_s2] sm:$0xff]   ;;  %v82_v47 = vlaneseq }
  0x28   :  { %901 = vmatprep.subr.bf16.mxu1 %v1171_v0  ;;  %763 = vst [vmem:[#allocation8] sm:$0x3] %v1171_v0  ;;  %181 = vmatprep.mubr.bf16.mxu0 %v1172_v1  ;;  %v1030_v3 = vld [vmem:[%s1464_s2 + $0x8] sm:$0xff]   ;;  %v1031_v6 = vld [vmem:[%s1464_s2 + $0x10] sm:$0xff]   ;;  %v1032_v10 = vld [vmem:[%s1464_s2 + $0x18] sm:$0xff]   ;;  %vm142_vm1 = vcmask 523264  }
  0x29   :  { %917 = vmatprep.mubr.msk.bf16.mxu1 %vm1173_vm0, %v1171_v0  ;;  %902 = vmatpush3.bf16.msra.mxu1 %v1029_v2  ;;  %v1033_v4 = vld [vmem:[%s1466_s4 + $0x4] ss:$8 sps:$4 sm:$0xff]   ;;  %v1035_v5 = vld [vmem:[%s1466_s4] ss:$8 sps:$4 sm:$0xff]   ;;  %v1037_v7 = vld [vmem:[%s1466_s4 + $0x14] ss:$8 sps:$4 sm:$0xff]  }
  0x2a   :  { %903 = vmatprep.subr.bf16.mxu1 %v1171_v0  ;;  %149 = vmatprep.subr.bf16.mxu0 %v1033_v4  ;;  %v1039_v8 = vld [vmem:[%s1466_s4 + $0x10] ss:$8 sps:$4 sm:$0xff]   ;;  %v1041_v9 = vld [vmem:[%s1466_s4 + $0x24] ss:$8 sps:$4 sm:$0xff]   ;;  %v1043_v11 = vld [vmem:[%s1466_s4 + $0x20] ss:$8 sps:$4 sm:$0xff]  }
  0x2b   :  { %150 = vmatpush1.bf16.msra.mxu0 %v1035_v5  ;;  %v1045_v12 = vld [vmem:[%s1466_s4 + $0x34] ss:$8 sps:$4 sm:$0xff]   ;;  %v1036_v13 = vld [vmem:[%s1464_s2 + $0x20] sm:$0xff]   ;;  %v1047_v14 = vld [vmem:[%s1466_s4 + $0x30] ss:$8 sps:$4 sm:$0xff]   ;;  %v1381_v53 = vshrl.u32 %v82_v47, 7 }
  0x2c   :  { %151 = vmatprep.subr.bf16.mxu0 %v1037_v7  ;;  %v352_v15 = vld [vmem:[%s1470_s8] sm:$0xff]  ;;  %v353_v16 = vld [vmem:[%s1470_s8 + $0x8] sm:$0xff]  ;;  %v354_v20 = vld [vmem:[%s1470_s8 + $0x10] sm:$0xff]  ;;  %v1174_v50 = vmov 1966171168   ;;  %vm453_vm2 = vcmask 64512  }
  0x2d   :  { %904 = vmatpush3.bf16.msra.mxu1 %v1030_v3  ;;  %v1040_v17 = vld [vmem:[%s1464_s2 + $0x28] sm:$0xff]   ;;  %v987_v18 = vpack.c.bf16 %v353_v16, %v352_v15  ;;  %v1049_v19 = vld [vmem:[#allocation2] sm:$0xff]   ;;  %v355_v21 = vld [vmem:[%s1470_s8 + $0x18] sm:$0xff]  ;;  %v317_v51 = vunpack.c.l.s4 %v1174_v50  ;;  %v84_v56 = vsub.s32 0, %v1381_v53  ;;  %vm779_vm3 = vcmask 130112  }
  0x2e   :  { %905 = vmatprep.subr.bf16.mxu1 %v1171_v0  ;;  %v1044_v22 = vld [vmem:[%s1464_s2 + $0x30] sm:$0xff]   ;;  %v356_v23 = vld [vmem:[%s1470_s8 + $0x20] sm:$0xff]  ;;  %v357_v24 = vld [vmem:[%s1470_s8 + $0x28] sm:$0xff]  ;;  %v991_v25 = vpack.c.bf16 %v355_v21, %v354_v20  ;;  %vm653_vm4 = vcmask 1041409   ;;  %vm792_vm5 = vcmask 123904  }
  0x2f   :  { %152 = vmatpush1.bf16.msra.mxu0 %v1039_v8  ;;  %v1048_v26 = vld [vmem:[%s1464_s2 + $0x38] sm:$0xff]   ;;  %v202_v27 = vld [vmem:[%s1463_s1] sm:$0x3]  ;;  %v995_v28 = vpack.c.bf16 %v357_v24, %v356_v23  ;;  %v1050_v29 = vld [vmem:[#allocation2 + $0x8] sm:$0xff]   ;;  %v318_v54 = vunpack.c.0.s8 %v317_v51 }
  0x30   :  { %153 = vmatprep.subr.bf16.mxu0 %v1041_v9  ;;  %v358_v30 = vld [vmem:[%s1470_s8 + $0x30] sm:$0xff]  ;;  %v359_v31 = vld [vmem:[%s1470_s8 + $0x38] sm:$0xff]  ;;  %v203_v32 = vpack.c.bf16 %v202_v27, %v202_v27  ;;  %v360_v34 = vld [vmem:[%s1470_s8 + $0x40] sm:$0xff] }
  0x31   :  { %906 = vmatpush3.bf16.msra.mxu1 %v1031_v6  ;;  %v999_v33 = vpack.c.bf16 %v359_v31, %v358_v30  ;;  %v361_v35 = vld [vmem:[%s1470_s8 + $0x48] sm:$0xff]  ;;  %v362_v37 = vld [vmem:[%s1470_s8 + $0x50] sm:$0xff]  ;;  %v363_v38 = vld [vmem:[%s1470_s8 + $0x58] sm:$0xff]  ;;  %v321_v60 = vsub.s32 %v318_v54, %v1381_v53 }
  0x32   :  { %907 = vmatprep.subr.bf16.mxu1 %v1171_v0  ;;  %v1003_v36 = vpack.c.bf16 %v361_v35, %v360_v34  ;;  %v1007_v39 = vpack.c.bf16 %v363_v38, %v362_v37  ;;  %v364_v40 = vld [vmem:[%s1470_s8 + $0x60] sm:$0xff]  ;;  %v365_v41 = vld [vmem:[%s1470_s8 + $0x68] sm:$0xff]  ;;  %v366_v43 = vld [vmem:[%s1470_s8 + $0x70] sm:$0xff] }
  0x33   :  { %154 = vmatpush1.bf16.msra.mxu0 %v1043_v11  ;;  %v1011_v42 = vpack.c.bf16 %v365_v41, %v364_v40  ;;  %v367_v44 = vld [vmem:[%s1470_s8 + $0x78] sm:$0xff]  ;;  %v836_v57 = vld [vmem:[%s1465_s3] ss:$0 sm:$0xff] }
  0x34   :  { %155 = vmatprep.subr.bf16.mxu0 %v1045_v12  ;;  %v1015_v45 = vpack.c.bf16 %v367_v44, %v366_v43  ;;  %v1392_v59 = vld [vmem:[%s1467_s5] sm:$0x3] }
  0x35   :  { %908 = vmatpush3.bf16.msra.mxu1 %v1032_v10  ;;  %v85_v3 = vrot.slane %v1392_v59, %v84_v56  ;;  %v508_v20 = vld [vmem:[%s1471_s9] sm:$0xff]  ;;  %s1175_s9 = smov [#allocation8]  }
  0x36   :  { %909 = vmatprep.subr.bf16.mxu1 %v1171_v0  ;;  %s810_s6 = sshll.u32 %s1175_s9, 4  ;;  %s811_s6 = int_to_ptr.vmem [resolvable:$true] %s810_s6 }
  0x37   :  { %156 = vmatpush1.bf16.msra.mxu0 %v1047_v14  ;;  %s1115_s25 = scalar_lea.vmem %s811_s6, 32  ;;  %p1120_p3 = scmp.lt.s32.totalorder %s811_s6, %s811_s6 }
  0x38   :  { %988 = vmatprep.subr.bf16.mxu0 %v987_v18  ;;  %p1116_p2 = scmp.ne.s32.totalorder %s811_s6, %s1115_s25  ;;  %p1121_p4 = scmp.lt.s32.totalorder %s1115_s25, %s1115_s25 }
  0x39   :  { %910 = vmatpush3.bf16.msra.mxu1 %v1036_v13 }
  0x3a   :  { %911 = vmatprep.subr.bf16.mxu1 %v1171_v0  ;;  %834 = vmatmul.mubr.msk.bf16.vlgmr.msra.gmra.mrb[0].mxu0 %vm142_vm1, %v1049_v19  ;;  %p1122_p5 = por %p1121_p4, %p1120_p3 }
  0x3b   :  { %191 = vmatprep.mubr.bf16.mxu0 %v1172_v1  ;;  %990 = vmatpush3.bf16.msra.mxu0 %v987_v18 }
  0x3c   :  { %992 = vmatprep.subr.bf16.mxu0 %v991_v25  ;;  %p1123_p6 = pnand %p1122_p5, %p1116_p2 }
  0x3d   :  { %912 = vmatpush3.bf16.msra.mxu1 %v1040_v17 }
  0x3e   :  { %913 = vmatprep.subr.bf16.mxu1 %v1171_v0 }
  0x3f   :  { %994 = vmatpush3.bf16.msra.mxu0 %v991_v25 }
  0x40   :  { %996 = vmatprep.subr.bf16.mxu0 %v995_v28 }
  0x41   :  { %914 = vmatpush3.bf16.msra.mxu1 %v1044_v22 }
  0x42   :  { %915 = vmatprep.subr.bf16.mxu1 %v1171_v0  ;;  %835 = vmatmul.mubr.msk.bf16.gmra.mrb[4].mxu0 %vm142_vm1, %v1050_v29 }
  0x43   :  { %998 = vmatpush3.bf16.msra.mxu0 %v995_v28 }
  0x44   :  { %1000 = vmatprep.subr.bf16.mxu0 %v999_v33 }
  0x45   :  { %916 = vmatpush3.bf16.msra.mxu1 %v1048_v26 }
  0x46   :  { %967 = vmatprep.subr.bf16.mxu1 %v1171_v0 }
  0x47   :  { %1002 = vmatpush3.bf16.msra.mxu0 %v999_v33 }
  0x48   :  { %918 = vmatmul.mubr.bf16.vlgmr.msra.gmra.mrb[0].mxu1 %v203_v32  ;;  %1004 = vmatprep.subr.bf16.mxu0 %v1003_v36 }
  0x49   :  { %983 = vmatprep.mubr.msk.bf16.mxu1 %vm1173_vm0, %v1171_v0 }
  0x4b   :  { %1006 = vmatpush3.bf16.msra.mxu0 %v1003_v36 }
  0x4c   :  { %1008 = vmatprep.subr.bf16.mxu0 %v1007_v39 }
  0x4f   :  { %1010 = vmatpush3.bf16.msra.mxu0 %v1007_v39 }
  0x50   :  { %1012 = vmatprep.subr.bf16.mxu0 %v1011_v42 }
  0x53   :  { %1014 = vmatpush3.bf16.msra.mxu0 %v1011_v42 }
  0x54   :  { %1016 = vmatprep.subr.bf16.mxu0 %v1015_v45 }
  0x57   :  { %1018 = vmatpush3.bf16.msra.mxu0 %v1015_v45 }
  0x58   :  { %959 = vmatprep.subr.mxu0 %v508_v20 }
 0x10d   :  { %v183_v46 = vpop.f32.mrb[0].mxu0 }
 0x10e   :  { %v1376_v48 = vpop.f32.mrb[1].mxu0  ;;  %v184_v9 = vadd.f32 %v183_v46, %v85_v3 }
 0x10f   :  { %v187_v49 = vpop.f32.mrb[2].mxu0 }
 0x110   :  { %v1378_v52 = vpop.f32.mrb[3].mxu0  ;;  %v188_v10 = vadd.f32 %v187_v49, %v85_v3 }
 0x115   :  { %v193_v55 = vpop.f32.mrb[4].mxu0 }
 0x116   :  { %v1387_v58 = vpop.f32.mrb[5].mxu0  ;;  %v194_v11 = vadd.f32 %v193_v55, %v85_v3 }
 0x117   :  { %v197_v61 = vpop.f32.mrb[6].mxu0 }
 0x118   :  { %v1395_v63 = vpop.f32.mrb[7].mxu0  ;;  %v198_v13 = vadd.f32 %v197_v61, %v85_v3 }
 0x11b   :  { %v309_v62 = vpop.f32.mrb[0].mxu1 }
 0x11c   :  { %v310_v1 = vadd.f32 %v836_v57, %v309_v62  ;;  %v919_v2 = vpop.f32.mrb[1].mxu1 }
 0x11d   :  { %v312_v4 = vpop.f32.mrb[2].mxu1 }
 0x11e   :  { %v322_v5 = vrot.slane %v310_v1, %v321_v60  ;;  %v920_v6 = vpop.f32.mrb[3].mxu1 }
 0x120   :  { %v323_v7 = vcombine.high %v322_v5, %v322_v5  ;;  %v330_v8 = vrot.slane %v322_v5, %v321_v60 }
 0x122   :  { %v337_v12 = vrot.slane %v323_v7, %v321_v60  ;;  %v341_v14 = vrot.slane %v330_v8, %v84_v56 }
 0x124   :  { %v345_v15 = vrot.slane %v337_v12, %v84_v56  ;;  %v348_v16 = vmul.f32 %v341_v14, %v184_v9  ;;  %v349_v17 = vmul.f32 %v341_v14, %v188_v10 }
 0x126   :  { %v350_v18 = vmul.f32 %v345_v15, %v194_v11  ;;  %v351_v19 = vmul.f32 %v345_v15, %v198_v13  ;;  %953 = vmatprep.mubr.f32.mxu0 %v348_v16 }
 0x127   :  { %954 = vmatmul.mubr.f32.vlgmr.msra.gmra.mrb[8].mxu0 %v349_v17 }
 0x128   :  { %956 = vmatprep.mubr.f32.mxu0 %v350_v18  ;;  %960 = vmatpush3.msra.mxu0 %v508_v20 }
 0x12b   :  { %957 = vmatmul.mubr.f32.gmra.mrb[10].mxu0 %v351_v19 }
 0x1fa   :  { %v955_v21 = vpop.f32.mrb[8].mxu0 }
 0x1fb   :  { %v455_v22 = vsel %vm453_vm2, %v955_v21, -inf  ;;  %v434_v23 = vpop.f32.mrb[9].mxu0 }
 0x1fc   :  { %v454_v24 = vsel %vm453_vm2, %v434_v23, -inf }
 0x1fd   :  { %v456_v25 = vmax.f32 %v454_v24, %v455_v22 }
 0x1fe   :  { %v958_v26 = vpop.f32.mrb[10].mxu0 }
 0x1ff   :  { %v457_v27 = vrot.slane %v456_v25, 4  ;;  %v464_v28 = vsel %vm453_vm2, %v958_v26, -inf  ;;  %v444_v29 = vpop.f32.mrb[11].mxu0 }
 0x200   :  { %v463_v30 = vsel %vm453_vm2, %v444_v29, -inf }
 0x201   :  { %v458_v31 = vmax.f32 %v456_v25, %v457_v27  ;;  %v465_v32 = vmax.f32 %v463_v30, %v464_v28  ;;  %v1051_v27 = vld [vmem:[#allocation5] sm:$0xff]   ;;  %v1052_v28 = vld [vmem:[#allocation5 + $0x8] sm:$0xff]   ;;  %v1054_v30 = vld [vmem:[#allocation5 + $0x18] sm:$0xff]  }
 0x202   :  { %968 = vmatpush3.bf16.msra.mxu1 %v1051_v27 }
 0x203   :  { %v459_v33 = vrot.slane %v458_v31, 2  ;;  %v466_v34 = vrot.slane %v465_v32, 4  ;;  %969 = vmatprep.subr.bf16.mxu1 %v1171_v0 }
 0x205   :  { %v460_v35 = vmax.f32 %v458_v31, %v459_v33  ;;  %v467_v36 = vmax.f32 %v465_v32, %v466_v34  ;;  %v1055_v31 = vld [vmem:[#allocation5 + $0x20] sm:$0xff]   ;;  %v1056_v32 = vld [vmem:[#allocation5 + $0x28] sm:$0xff]   ;;  %v1057_v33 = vld [vmem:[#allocation5 + $0x30] sm:$0xff]  }
 0x206   :  { %970 = vmatpush3.bf16.msra.mxu1 %v1052_v28  ;;  %v1058_v34 = vld [vmem:[#allocation5 + $0x38] sm:$0xff]  }
 0x207   :  { %v461_v37 = vrot.slane %v460_v35, 1  ;;  %v468_v38 = vrot.slane %v467_v36, 2  ;;  %971 = vmatprep.subr.bf16.mxu1 %v1171_v0 }
 0x209   :  { %v462_v39 = vmax.f32 %v460_v35, %v461_v37  ;;  %v469_v40 = vmax.f32 %v467_v36, %v468_v38  ;;  %v769_v35 = vand.u32 127, %v82_v47 }
 0x20b   :  { %v472_v41 = vsub.f32 %v434_v23, %v462_v39  ;;  %v473_v42 = vsub.f32 %v955_v21, %v462_v39  ;;  %v470_v43 = vrot.slane %v469_v40, 1  ;;  %v774_v37 = vadd.s32 4294967288, %v769_v35 }
 0x20d   :  { %v476_v44 = vmul.f32 1.442695, %v472_v41  ;;  %v478_v45 = vmul.f32 1.442695, %v473_v42  ;;  %v471_v46 = vmax.f32 %v469_v40, %v470_v43  ;;  %v777_v40 = vsub.s32 %v774_v37, %v1381_v53 }
 0x20e   :  { %v772_v42 = vsub.s32 %v769_v35, %v1381_v53 }
 0x20f   :  { %1059 = vpow2.f32 %v476_v44  ;;  %v474_v49 = vsub.f32 %v444_v29, %v471_v46  ;;  %v475_v50 = vsub.f32 %v958_v26, %v471_v46  ;;  %v1053_v29 = vld [vmem:[#allocation5 + $0x10] sm:$0xff]  }
 0x210   :  { %1061 = vpow2.f32 %v478_v45  ;;  %972 = vmatpush3.bf16.msra.mxu1 %v1053_v29 }
 0x211   :  { %v480_v51 = vmul.f32 1.442695, %v474_v49  ;;  %v482_v54 = vmul.f32 1.442695, %v475_v50  ;;  %973 = vmatprep.subr.bf16.mxu1 %v1171_v0 }
 0x213   :  { %1063 = vpow2.f32 %v480_v51 }
 0x214   :  { %1065 = vpow2.f32 %v482_v54  ;;  %974 = vmatpush3.bf16.msra.mxu1 %v1054_v30 }
 0x215   :  { %975 = vmatprep.subr.bf16.mxu1 %v1171_v0 }
 0x218   :  { %976 = vmatpush3.bf16.msra.mxu1 %v1055_v31 }
 0x219   :  { %v1060_v55 = vpop.eup %1059  ;;  %977 = vmatprep.subr.bf16.mxu1 %v1171_v0 }
 0x21a   :  { %v1062_v56 = vpop.eup %1061  ;;  %v484_v57 = vsel %vm453_vm2, %v1060_v55, 0.0 }
 0x21b   :  { %v485_v60 = vsel %vm453_vm2, %v1062_v56, 0.0 }
 0x21c   :  { %v486_v61 = vadd.f32 %v485_v60, %v484_v57  ;;  %978 = vmatpush3.bf16.msra.mxu1 %v1056_v32 }
 0x21d   :  { %v1064_v62 = vpop.eup %1063  ;;  %979 = vmatprep.subr.bf16.mxu1 %v1171_v0 }
 0x21e   :  { %v1066_v1 = vpop.eup %1065  ;;  %v487_v2 = vrot.slane %v486_v61, 4  ;;  %v493_v3 = vsel %vm453_vm2, %v1064_v62, 0.0 }
 0x21f   :  { %v494_v4 = vsel %vm453_vm2, %v1066_v1, 0.0 }
 0x220   :  { %v488_v5 = vadd.f32 %v487_v2, %v486_v61  ;;  %v495_v6 = vadd.f32 %v494_v4, %v493_v3  ;;  %980 = vmatpush3.bf16.msra.mxu1 %v1057_v33 }
 0x221   :  { %981 = vmatprep.subr.bf16.mxu1 %v1171_v0 }
 0x222   :  { %v489_v7 = vrot.slane %v488_v5, 2  ;;  %v496_v8 = vrot.slane %v495_v6, 4 }
 0x224   :  { %v490_v9 = vadd.f32 %v489_v7, %v488_v5  ;;  %v497_v10 = vadd.f32 %v496_v8, %v495_v6  ;;  %982 = vmatpush3.bf16.msra.mxu1 %v1058_v34 }
 0x226   :  { %v491_v11 = vrot.slane %v490_v9, 1  ;;  %v498_v12 = vrot.slane %v497_v10, 2 }
 0x228   :  { %v499_v13 = vadd.f32 %v498_v12, %v497_v10  ;;  %v492_v14 = vadd.f32 %v491_v11, %v490_v9 }
 0x22a   :  { %v500_v15 = vrot.slane %v499_v13, 1  ;;  %1067 = vrcp.f32 %v492_v14 }
 0x22c   :  { %v501_v16 = vadd.f32 %v500_v15, %v499_v13 }
 0x22e   :  { %1069 = vrcp.f32 %v501_v16 }
 0x234   :  { %v1068_v17 = vpop.eup %1067 }
 0x235   :  { %v503_v18 = vmul.f32 %v1068_v17, %v1060_v55  ;;  %v504_v19 = vmul.f32 %v1068_v17, %v1062_v56  ;;  %v88_v56 = vsub.s32 1, %v1381_v53 }
 0x237   :  { %961 = vmatprep.mubr.msk.f32.mxu0 %vm453_vm2, %v503_v18  ;;  %v746_v20 = vsel %vm453_vm2, %v503_v18, 0.0  ;;  %v749_v24 = vsel %vm453_vm2, %v504_v19, 0.0  ;;  %v89_v57 = vrot.slane %v1392_v59, %v88_v56 }
 0x238   :  { %v1070_v21 = vpop.eup %1069  ;;  %747 = vadd.xlane.f32.xlu0 %v746_v20  ;;  %962 = vmatmul.mubr.msk.f32.vlgmr.msra.gmra.mrb[12].mxu0 %vm453_vm2, %v504_v19 }
 0x239   :  { %v506_v22 = vmul.f32 %v1070_v21, %v1064_v62  ;;  %v507_v23 = vmul.f32 %v1070_v21, %v1066_v1  ;;  %v190_v60 = vadd.f32 %v1378_v52, %v89_v57  ;;  %v186_v61 = vadd.f32 %v1376_v48, %v89_v57 }
 0x23a   :  { %v200_v4 = vadd.f32 %v1395_v63, %v89_v57  ;;  %v196_v6 = vadd.f32 %v1387_v58, %v89_v57 }
 0x23b   :  { %964 = vmatprep.mubr.msk.f32.mxu0 %vm453_vm2, %v506_v22  ;;  %v752_v25 = vsel %vm453_vm2, %v506_v22, 0.0  ;;  %v755_v26 = vsel %vm453_vm2, %v507_v23, 0.0 }
 0x23c   :  { %750 = vadd.xlane.f32.xlu0 %v749_v24  ;;  %753 = vadd.xlane.f32.xlu1 %v752_v25 }
 0x23d   :  { %965 = vmatmul.mubr.msk.f32.gmra.mrb[14].mxu0 %vm453_vm2, %v507_v23 }
 0x240   :  { %756 = vadd.xlane.f32.xlu1 %v755_v26 }
 0x2c5   :  { %v748_v36 = vpop.xlane.xlu0 %747 }
 0x2c6   :  { %v759_v43 = vmul.f32 0.125, %v748_v36 }
 0x2c8   :  { %v773_v0 = vrot.slane %v759_v43, %v772_v42 }
 0x2c9   :  { %v751_v38 = vpop.xlane.xlu0 %750  ;;  %v754_v39 = vpop.xlane.xlu1 %753 }
 0x2ca   :  { %v760_v41 = vmul.f32 0.125, %v751_v38  ;;  %v761_v44 = vmul.f32 0.125, %v754_v39 }
 0x2cc   :  { %v778_v46 = vrot.slane %v760_v41, %v777_v40  ;;  %v784_v50 = vrot.slane %v761_v44, %v772_v42 }
 0x2cd   :  { %v757_v45 = vpop.xlane.xlu1 %756 }
 0x2ce   :  { %v762_v49 = vmul.f32 0.125, %v757_v45  ;;  %v780_v47 = vsel %vm779_vm3, %v778_v46, %v773_v0 }
 0x2d0   :  { %v788_v51 = vrot.slane %v762_v49, %v777_v40 }
 0x2d2   :  { %v789_v54 = vsel %vm779_vm3, %v788_v51, %v784_v50 }
 0x2d3   :  { %v790_v55 = vsel %vm653_vm4, %v789_v54, %v780_v47 }
 0x2d4   :  { %793 = vst.msk [vmem:[#allocation8] sm:$0x3] %vm792_vm5, %v790_v55 }
 0x30b   :  { %v963_v62 = vpop.f32.mrb[12].mxu0 }
 0x30c   :  { %v607_v1 = vmul.f32 %v963_v62, %v190_v60  ;;  %v587_v2 = vpop.f32.mrb[13].mxu0 }
 0x30d   :  { %v606_v3 = vmul.f32 %v587_v2, %v186_v61 }
 0x30f   :  { %v610_v5 = vadd.f32 %v607_v1, %v606_v3 }
 0x310   :  { %v966_v7 = vpop.f32.mrb[14].mxu0 }
 0x311   :  { %v611_v8 = vrot.slane %v610_v5, 4  ;;  %v609_v9 = vmul.f32 %v966_v7, %v200_v4  ;;  %v597_v10 = vpop.f32.mrb[15].mxu0 }
 0x312   :  { %v608_v53 = vmul.f32 %v597_v10, %v196_v6 }
 0x313   :  { %v612_v11 = vadd.f32 %v611_v8, %v610_v5 }
 0x314   :  { %v617_v59 = vadd.f32 %v609_v9, %v608_v53 }
 0x315   :  { %v613_v12 = vrot.slane %v612_v11, 2 }
 0x316   :  { %v618_v52 = vrot.slane %v617_v59, 4 }
 0x317   :  { %v614_v13 = vadd.f32 %v613_v12, %v612_v11 }
 0x318   :  { %v619_v48 = vadd.f32 %v618_v52, %v617_v59 }
 0x319   :  { %v615_v14 = vrot.slane %v614_v13, 1 }
 0x31a   :  { %v620_v15 = vrot.slane %v619_v48, 2 }
 0x31b   :  { %v616_v16 = vadd.f32 %v615_v14, %v614_v13 }
 0x31c   :  { %v621_v17 = vadd.f32 %v620_v15, %v619_v48 }
 0x31d   :  { %v624_v63 = vpack.c.bf16 %v616_v16, %v616_v16 }
 0x31e   :  { %v622_v18 = vrot.slane %v621_v17, 1 }
 0x31f   :  { %v651_v58 = vunpack.c.l.b16 %v624_v63 }
 0x320   :  { %v623_v19 = vadd.f32 %v622_v18, %v621_v17 }
 0x322   :  { %v625_v20 = vpack.c.bf16 %v623_v19, %v623_v19 }
 0x324   :  { %v652_v21 = vunpack.c.l.b16 %v625_v20 }
 0x326   :  { %v654_v22 = vsel %vm653_vm4, %v652_v21, %v651_v58 }
 0x327   :  { %v655_v23 = vpack.c.b16 %v654_v22, %v654_v22 }
 0x329   :  { %984 = vmatmul.mubr.bf16.vlgmr.msra.gmra.mrb[4].mxu1 %v655_v23 }
 0x32a   :  { %1126 = shalt.err (!%p1123_p6)
}
 0x32b   :  { %s1127_s28 = scalar_lea.hbm %s1473_s11, 32 }
 0x32c   :  { %p1128_p7 = scmp.ne.s32.totalorder %s1473_s11, %s1127_s28  ;;  %p1131_p8 = scmp.lt.u32.totalorder %s1127_s28, %s1473_s11 }
 0x32e   :  { %p1133_p9 = pnand %p1131_p8, %p1128_p7 }
 0x330   :  { %1136 = shalt.err (!%p1133_p9)
}
 0x331   :  { %813 = dma.vmem_to_hbm [thread:$0]  %s811_s6, 32, %s1473_s11, [#allocation9]   ;;  %v849_v24 = vld [vmem:[%s1469_s7] ss:$0 sm:$0xff] }
 0x332   :  { %s1176_s4 = smov [#allocation7]  }
 0x333   :  { %s800_s16 = sshll.u32 %s1176_s4, 4  ;;  %s801_s16 = int_to_ptr.vmem [resolvable:$true] %s800_s16 }
 0x334   :  { %s1137_s17 = scalar_lea.vmem %s801_s16, 32  ;;  %p1142_p11 = scmp.lt.s32.totalorder %s801_s16, %s801_s16 }
 0x335   :  { %p1138_p10 = scmp.ne.s32.totalorder %s801_s16, %s1137_s17  ;;  %p1143_p12 = scmp.lt.s32.totalorder %s1137_s17, %s1137_s17 }
 0x337   :  { %p1144_p13 = por %p1143_p12, %p1142_p11 }
 0x339   :  { %p1145_p0 = pnand %p1144_p13, %p1138_p10 }
 0x3fc   :  { %v739_v25 = vpop.f32.mrb[4].mxu1 }
 0x3fd   :  { %v740_v26 = vadd.f32 %v849_v24, %v739_v25  ;;  %v985_v27 = vpop.f32.mrb[5].mxu1 }
 0x3fe   :  { %v742_v28 = vpop.f32.mrb[6].mxu1 }
 0x3ff   :  { %745 = vst [vmem:[#allocation7] sm:$0x3] %v740_v26  ;;  %v986_v29 = vpop.f32.mrb[7].mxu1 }
 0x400   :  { %1148 = shalt.err (!%p1145_p0)
}
 0x401   :  { %s1149_s7 = scalar_lea.hbm %s1472_s10, 32 }
 0x402   :  { %p1150_p1 = scmp.ne.s32.totalorder %s1472_s10, %s1149_s7  ;;  %p1153_p2 = scmp.lt.u32.totalorder %s1149_s7, %s1472_s10 }
 0x404   :  { %p1155_p3 = pnand %p1153_p2, %p1150_p1 }
 0x406   :  { %1158 = shalt.err (!%p1155_p3)
}
 0x407   :  { %803 = dma.vmem_to_hbm [thread:$0]  %s801_s16, 32, %s1472_s10, [#allocation4]  }
 0x408   :  { %1163 = dma.done.wait [#allocation4], 32  }
 0x409   :  { %1164 = vsyncadd [#allocation4], 4294967264 }
 0x40a   :  { %1165 = dma.done.wait [#allocation9], 32  }
 0x40b   :  { %1166 = vsyncadd [#allocation9], 4294967264 }
 0x40c   :  { %820 = vsyncpa [#allocation3], 1 }
 0x40d   :  { %821 = vsyncpa [#allocation6], 1 }
 0x40e   :  { %822 = vsyncpa [#allocation4], 1 }
 0x40f   :  { %823 = vsyncpa [#allocation9], 1 }

</bundles_post_ra>
